<compile_context>
chip_gen: v7x
topology: tpu7x:2x2x1
jax: 0.10.0
libtpu: 0.0.40
codegen_flags: <defaults>
</compile_context>

<pallas_src>
import jax
import jax.numpy as jnp
from jax.experimental import pallas as pl
from jax.experimental.pallas import tpu as pltpu


# ----------------------------------------------------------------------------
# Generic linear (matmul + bias) kernel: whole-M blocks (<=1024 rows per step)
# ----------------------------------------------------------------------------
def _linear_kernel(x_ref, w_ref, b_ref, o_ref):
    o_ref[...] = (
        jnp.dot(x_ref[...], w_ref[...], preferred_element_type=jnp.float32)
        + b_ref[...]
    )


def pallas_linear(x, w, b=None):
    """x: (M, K) f32, w: (K, Nout), b: (Nout,) or None -> (M, Nout)."""
    M, K = x.shape
    Nout = w.shape[1]
    if b is None:
        b = jnp.zeros((Nout,), jnp.float32)
    b2 = b.reshape(1, Nout).astype(jnp.float32)
    # Whole-M block when it fits, otherwise 1024-row tiles: at the sizes used
    # here every call is a single grid step (kills per-step pipeline overhead).
    M8 = ((M + 7) // 8) * 8
    TM = M8 if M8 <= 1024 else 1024
    Mp = ((M + TM - 1) // TM) * TM
    if Mp != M:
        x = jnp.pad(x, ((0, Mp - M), (0, 0)))
    out = pl.pallas_call(
        _linear_kernel,
        out_shape=jax.ShapeDtypeStruct((Mp, Nout), jnp.float32),
        grid_spec=pltpu.PrefetchScalarGridSpec(
            num_scalar_prefetch=0,
            grid=(Mp // TM,),
            in_specs=[
                pl.BlockSpec((TM, K), lambda i: (i, 0)),
                pl.BlockSpec((K, Nout), lambda i: (0, 0)),
                pl.BlockSpec((1, Nout), lambda i: (0, 0)),
            ],
            out_specs=pl.BlockSpec((TM, Nout), lambda i: (i, 0)),
        ),
        compiler_params=pltpu.CompilerParams(dimension_semantics=("parallel",)),
    )(x.astype(jnp.float32), w.astype(jnp.float32), b2)
    return out[:M]


# ----------------------------------------------------------------------------
# Fused GCN kernel:
#   node_emb + edge_emb projections + all L GCN layers, G graphs per grid step.
#   Only the node output is written back (edge output unused downstream).
# ----------------------------------------------------------------------------
def _gcn_fused_kernel(gn_ref, er_ref, wn_ref, we_ref,
                      weu_ref, beu_ref, wx_ref, bx_ref, xo_ref):
    gn = gn_ref[...]                      # (G, N, d_v)  raw (masked) node feats
    er = er_ref[...]                      # (G, N, N, d_e) raw edge feats
    G, N, d_v = gn.shape
    d_e = er.shape[-1]
    H = wn_ref.shape[1]
    L = weu_ref.shape[0]

    # Node / edge embedding (bias-free Linear layers of the reference model).
    x = jnp.dot(gn.reshape(G * N, d_v), wn_ref[...],
                preferred_element_type=jnp.float32).reshape(G, N, H)
    e = jnp.dot(er.reshape(G * N * N, d_e), we_ref[...],
                preferred_element_type=jnp.float32).reshape(G, N, N, H)

    # GCN layers (static unroll over L; per-layer weights are static slices of
    # the stacked VMEM-resident weight refs).
    for l in range(L):
        Ue = (jnp.dot(e.reshape(G * N * N, H), weu_ref[l],
                      preferred_element_type=jnp.float32)
              + beu_ref[l]).reshape(G, N, N, H)
        # Fused node projections [Vxe | Ux | Vxn] = x @ [W_ev|W_nu|W_nv] + b
        xp = (jnp.dot(x.reshape(G * N, H), wx_ref[l],
                      preferred_element_type=jnp.float32)
              + bx_ref[l]).reshape(G, N, 3 * H)
        Vxe = xp[..., 0:H]
        Ux = xp[..., H:2 * H]
        Vxn = xp[..., 2 * H:3 * H]

        # Edge gate: Ue_ij + Vxe_i + Vxe_j
        e_tmp = Ue + Vxe[:, :, None, :] + Vxe[:, None, :, :]
        gate = jax.nn.sigmoid(e_tmp)

        # Node update: Ux_i + mean-aggregation of gated neighbours
        agg = (jnp.sum(gate * Vxn[:, None, :, :], axis=2)
               / (1e-20 + jnp.sum(gate, axis=2)))
        x = x + jax.nn.relu(Ux + agg)
        if l < L - 1:                     # last layer's edge output is unused
            e = e + jax.nn.relu(e_tmp)

    xo_ref[...] = x


def _pick_group(BT):
    # Largest graph-block that still leaves >=2 grid steps (so a v7x megacore
    # can split the 'parallel' axis across both TensorCores).
    for g in (8, 4, 2, 1):
        if BT % g == 0 and (BT // g) >= 2:
            return g
    return BT


def pallas_gcn_stack(graph_node, e_raw, params):
    """graph_node: (BT, N, d_v), e_raw: (BT, N, N, d_e) -> (BT, N, H)."""
    BT, N, d_v = graph_node.shape
    d_e = e_raw.shape[-1]
    H = params["node_emb_w"].shape[1]
    L = len(params["gcn"])
    G = _pick_group(BT)

    # Stack per-layer weights; fuse the three x-side projections per layer.
    W_eu = jnp.stack([p["weu"] for p in params["gcn"]])                     # (L,H,H)
    b_eu = jnp.stack([p["beu"].reshape(1, H) for p in params["gcn"]])       # (L,1,H)
    W_x = jnp.stack([jnp.concatenate([p["wev"], p["wnu"], p["wnv"]], axis=1)
                     for p in params["gcn"]])                               # (L,H,3H)
    b_x = jnp.stack([jnp.concatenate([p["bev"], p["bnu"], p["bnv"]]).reshape(1, 3 * H)
                     for p in params["gcn"]])                               # (L,1,3H)

    return pl.pallas_call(
        _gcn_fused_kernel,
        out_shape=jax.ShapeDtypeStruct((BT, N, H), jnp.float32),
        grid_spec=pltpu.PrefetchScalarGridSpec(
            num_scalar_prefetch=0,
            grid=(BT // G,),
            in_specs=[
                pl.BlockSpec((G, N, d_v), lambda g: (g, 0, 0)),
                pl.BlockSpec((G, N, N, d_e), lambda g: (g, 0, 0, 0)),
                pl.BlockSpec((d_v, H), lambda g: (0, 0)),
                pl.BlockSpec((d_e, H), lambda g: (0, 0)),
                pl.BlockSpec((L, H, H), lambda g: (0, 0, 0)),
                pl.BlockSpec((L, 1, H), lambda g: (0, 0, 0)),
                pl.BlockSpec((L, H, 3 * H), lambda g: (0, 0, 0)),
                pl.BlockSpec((L, 1, 3 * H), lambda g: (0, 0, 0)),
            ],
            out_specs=pl.BlockSpec((G, N, H), lambda g: (g, 0, 0)),
        ),
        compiler_params=pltpu.CompilerParams(dimension_semantics=("parallel",)),
    )(graph_node, e_raw, params["node_emb_w"], params["edge_emb_w"],
      W_eu, b_eu, W_x, b_x)


# ----------------------------------------------------------------------------
# GRU kernel: single invocation, input projection pre-computed, fori_loop over T
# ----------------------------------------------------------------------------
def _gru_kernel(gi_ref, whh_ref, bhh_ref, out_ref):
    T, B, H3 = gi_ref.shape
    H = H3 // 3

    def body(t, h):
        gi = gi_ref[t]                    # (B, 3H), precomputed x@W_ih + b_ih
        gh = (jnp.dot(h, whh_ref[...], preferred_element_type=jnp.float32)
              + bhh_ref[...])
        r = jax.nn.sigmoid(gi[:, 0:H] + gh[:, 0:H])
        z = jax.nn.sigmoid(gi[:, H:2 * H] + gh[:, H:2 * H])
        n = jnp.tanh(gi[:, 2 * H:3 * H] + r * gh[:, 2 * H:3 * H])
        h_new = (1.0 - z) * n + z * h
        out_ref[t] = h_new
        return h_new

    jax.lax.fori_loop(0, T, body, jnp.zeros((B, H), jnp.float32))


def pallas_gru(x_tbf, w_ih, w_hh, b_ih, b_hh, H):
    T, B, NH = x_tbf.shape
    # Input projection for all T at once (no dependence on hidden state).
    gi = pallas_linear(x_tbf.reshape(T * B, NH), w_ih, b_ih).reshape(T, B, 3 * H)
    return pl.pallas_call(
        _gru_kernel,
        out_shape=jax.ShapeDtypeStruct((T, B, H), jnp.float32),
        grid_spec=pltpu.PrefetchScalarGridSpec(
            num_scalar_prefetch=0,
            grid=(1,),
            in_specs=[
                pl.BlockSpec((T, B, 3 * H), lambda i: (0, 0, 0)),
                pl.BlockSpec((H, 3 * H), lambda i: (0, 0)),
                pl.BlockSpec((1, 3 * H), lambda i: (0, 0)),
            ],
            out_specs=pl.BlockSpec((T, B, H), lambda i: (0, 0, 0)),
        ),
        compiler_params=pltpu.CompilerParams(dimension_semantics=("arbitrary",)),
    )(gi, w_hh, b_hh.reshape(1, 3 * H))


# ----------------------------------------------------------------------------
# Pointer-network decoder kernel: SINGLE invocation, in-kernel fori_loop over
# decode steps.  Encoder projections e_g/e_p hoisted out of the recurrence and
# fused into one matmul in the wrapper; LSTMCell input/recurrent matmuls fused
# into one (2D,4D) weight; log_p / sel written with dynamic-index stores.
# ----------------------------------------------------------------------------
def _decoder_kernel(enc_ref, eg_ref, ep_ref, dec0_ref, hx0_ref, cx0_ref, mask0_ref,
                    wlstm_ref, blstm_ref,
                    wqg_ref, bqg_ref, vg_ref,
                    wqp_ref, bqp_ref, vp_ref,
                    logp_ref, sel_ref):
    enc = enc_ref[...]                        # (BT, N, D)
    e_g = eg_ref[...]                         # (BT, N, D) = enc @ Wr_g + br_g
    e_p = ep_ref[...]                         # (BT, N, D) = enc @ Wr_p + br_p
    BT, N, D = enc.shape

    # Hoisted constants / weights (loaded once, live across the decode loop).
    w_lstm = wlstm_ref[...]                   # (2D, 4D) = [W_ih; W_hh]
    b_lstm = blstm_ref[...]                   # (1, 4D)  = b_ih + b_hh
    wq_g = wqg_ref[...]
    bq_g = bqg_ref[...]
    v_g = vg_ref[...].reshape(1, 1, D)
    wq_p = wqp_ref[...]
    bq_p = bqp_ref[...]
    v_p = vp_ref[...].reshape(1, 1, D)
    neg_inf = jnp.float32(-1e30)
    iota = jax.lax.broadcasted_iota(jnp.int32, (BT, N), 1)

    def step_fn(step, carry):
        x, hx, cx, mask = carry               # mask: 1.0 = masked

        # LSTMCell with fused input/recurrent matmul (torch gate order i,f,g,o)
        xh = jnp.concatenate([x, hx], axis=1)                      # (BT, 2D)
        gates = (jnp.dot(xh, w_lstm, preferred_element_type=jnp.float32)
                 + b_lstm)
        i_g = jax.nn.sigmoid(gates[:, 0 * D:1 * D])
        f_g = jax.nn.sigmoid(gates[:, 1 * D:2 * D])
        g_g = jnp.tanh(gates[:, 2 * D:3 * D])
        o_g = jax.nn.sigmoid(gates[:, 3 * D:4 * D])
        cy = f_g * cx + i_g * g_g
        hy = o_g * jnp.tanh(cy)

        # glimpse attention (use_tanh=False, masked)
        q_g = jnp.dot(hy, wq_g, preferred_element_type=jnp.float32) + bq_g
        u_g = jnp.sum(v_g * jnp.tanh(e_g + q_g[:, None, :]), axis=-1)
        u_g = jnp.where(mask > 0, neg_inf, u_g)
        a_g = jax.nn.softmax(u_g, axis=1)
        g_l = jnp.sum(a_g[:, :, None] * e_g, axis=1)               # (BT, D)

        # pointer attention (use_tanh=True, C=10, masked)
        q_p = jnp.dot(g_l, wq_p, preferred_element_type=jnp.float32) + bq_p
        u_p = jnp.sum(v_p * jnp.tanh(e_p + q_p[:, None, :]), axis=-1)
        logits = 10.0 * jnp.tanh(u_p)
        logits = jnp.where(mask > 0, neg_inf, logits)
        log_p = jax.nn.log_softmax(logits, axis=1)                  # (BT, N)

        # greedy argmax (first-max tie-break)
        maxv = jnp.max(log_p, axis=1, keepdims=True)
        cand = jnp.where(log_p >= maxv, iota, N)
        idx = jnp.min(cand, axis=1)                                 # (BT,)
        onehot = (iota == idx[:, None]).astype(jnp.float32)

        # per-step outputs (VMEM-resident output refs, one HBM writeback)
        logp_ref[step] = log_p
        sel_ref[step] = idx[:, None].astype(jnp.int32)

        new_x = jnp.sum(onehot[:, :, None] * enc, axis=1)           # selected input
        new_mask = jnp.minimum(mask + onehot, 1.0)
        return (new_x, hy, cy, new_mask)

    jax.lax.fori_loop(
        0, N, step_fn,
        (dec0_ref[...], hx0_ref[...], cx0_ref[...], mask0_ref[...]))


def pallas_decoder(enc, dec0, hx0, cx0, mask0, dp):
    BT, N, D = enc.shape
    # Step-invariant encoder projections fused into ONE matmul, split after.
    enc2 = enc.reshape(BT * N, D)
    wr = jnp.concatenate([dp["wr_g"], dp["wr_p"]], axis=1)          # (D, 2D)
    br = jnp.concatenate([dp["br_g"], dp["br_p"]])                  # (2D,)
    e_gp = pallas_linear(enc2, wr, br).reshape(BT, N, 2 * D)
    e_g = e_gp[..., :D]
    e_p = e_gp[..., D:]

    # Fused LSTMCell weights.
    w_lstm = jnp.concatenate([dp["w_ih"], dp["w_hh"]], axis=0)      # (2D, 4D)
    b_lstm = (dp["b_ih"] + dp["b_hh"]).reshape(1, 4 * D)

    w_dd = pl.BlockSpec((D, D), lambda s: (0, 0))
    b_d = pl.BlockSpec((1, D), lambda s: (0, 0))
    full3 = pl.BlockSpec((BT, N, D), lambda s: (0, 0, 0))
    full2 = pl.BlockSpec((BT, D), lambda s: (0, 0))
    logp, sel = pl.pallas_call(
        _decoder_kernel,
        out_shape=(jax.ShapeDtypeStruct((N, BT, N), jnp.float32),
                   jax.ShapeDtypeStruct((N, BT, 1), jnp.int32)),
        grid_spec=pltpu.PrefetchScalarGridSpec(
            num_scalar_prefetch=0,
            grid=(1,),
            in_specs=[
                full3,                                    # enc
                full3,                                    # e_g (hoisted)
                full3,                                    # e_p (hoisted)
                full2,                                    # dec0
                full2,                                    # hx0
                full2,                                    # cx0
                pl.BlockSpec((BT, N), lambda s: (0, 0)),  # mask0
                pl.BlockSpec((2 * D, 4 * D), lambda s: (0, 0)),  # [W_ih;W_hh]
                pl.BlockSpec((1, 4 * D), lambda s: (0, 0)),      # b_ih+b_hh
                w_dd, b_d, b_d,      # glimpse wq, bq, v
                w_dd, b_d, b_d,      # pointer wq, bq, v
            ],
            out_specs=[
                pl.BlockSpec((N, BT, N), lambda s: (0, 0, 0)),
                pl.BlockSpec((N, BT, 1), lambda s: (0, 0, 0)),
            ],
        ),
        compiler_params=pltpu.CompilerParams(dimension_semantics=("arbitrary",)),
    )(enc, e_g, e_p, dec0, hx0, cx0, mask0,
      w_lstm, b_lstm,
      dp["wq_g"], dp["bq_g"].reshape(1, D), dp["v_g"].reshape(1, D),
      dp["wq_p"], dp["bq_p"].reshape(1, D), dp["v_p"].reshape(1, D))
    return logp, sel


# ----------------------------------------------------------------------------
# Parameter init (deterministic, synthetic)
# ----------------------------------------------------------------------------
def init_params(key, cfg):
    N, d_v, d_e, d_s = cfg["N"], cfg["d_v"], cfg["d_e"], cfg["d_s"]
    d_h, d_dyn, d_w = cfg["d_h"], cfg["d_dyn"], cfg["d_w"]
    D = d_h + d_v + d_dyn

    def nxt(shape):
        nonlocal key
        key, sub = jax.random.split(key)
        return (0.1 * jax.random.normal(sub, shape)).astype(jnp.float32)

    params = {
        "worker_emb": nxt((cfg["num_worker_pd"], d_w)),
        "node_emb_w": nxt((d_v, d_h)),
        "edge_emb_w": nxt((d_e, d_h)),
        "start_w": nxt((d_s, D)),
        "start_b": nxt((D,)),
        "gcn": [],
        "gru": {
            "w_ih": nxt((N * d_h, 3 * d_h)),
            "w_hh": nxt((d_h, 3 * d_h)),
            "b_ih": nxt((3 * d_h,)),
            "b_hh": nxt((3 * d_h,)),
        },
        "graph_linear_w": nxt((d_h, N * d_h)),
        "graph_linear_b": nxt((N * d_h,)),
        "decoder": {
            "w_ih": nxt((D, 4 * D)), "w_hh": nxt((D, 4 * D)),
            "b_ih": nxt((4 * D,)), "b_hh": nxt((4 * D,)),
            "wq_g": nxt((D, D)), "bq_g": nxt((D,)),
            "wr_g": nxt((D, D)), "br_g": nxt((D,)), "v_g": nxt((D,)),
            "wq_p": nxt((D, D)), "bq_p": nxt((D,)),
            "wr_p": nxt((D, D)), "br_p": nxt((D,)), "v_p": nxt((D,)),
        },
    }
    for _ in range(cfg["gcn_num_layers"]):
        params["gcn"].append({
            "weu": nxt((d_h, d_h)), "beu": nxt((d_h,)),
            "wev": nxt((d_h, d_h)), "bev": nxt((d_h,)),
            "wnu": nxt((d_h, d_h)), "bnu": nxt((d_h,)),
            "wnv": nxt((d_h, d_h)), "bnv": nxt((d_h,)),
        })
    return params


# ----------------------------------------------------------------------------
# Forward pass (glue in JAX, heavy compute in Pallas kernels above)
# ----------------------------------------------------------------------------
def graph2route_forward(params, cfg, V, V_reach_mask, V_ft, V_pt, V_dt, V_num,
                        V_dispatch_mask, E, E_ed, E_sd, E_mask, start_idx, cou,
                        init_hx, init_cx):
    B, T, N = V_reach_mask.shape
    d_v, d_e, d_h, d_dyn = cfg["d_v"], cfg["d_e"], cfg["d_h"], cfg["d_dyn"]
    D = d_h + d_v + d_dyn
    BT = B * T

    bidx = jnp.arange(B)[:, None]                      # (B,1)
    t_c = V_ft[bidx, start_idx]                        # (B,T)
    E_ed_dif = E_ed[bidx, start_idx, :] * V_dispatch_mask   # (B,T,N)
    E_sd_dif = E_sd[bidx, start_idx, :] * V_dispatch_mask   # (B,T,N)

    V_b = jnp.broadcast_to(V[:, None, :, :], (B, T, N, V.shape[-1]))
    V_pt_b = jnp.broadcast_to(V_pt[:, None, :], (B, T, N))
    V_dt_b = jnp.broadcast_to(V_dt[:, None, :], (B, T, N))

    V_val = jnp.concatenate([
        V_b,
        (V_pt_b - t_c[:, :, None])[..., None],
        (t_c[:, :, None] - V_dt_b)[..., None],
        E_ed_dif[..., None],
        E_sd_dif[..., None],
        V_num[..., None],
    ], axis=-1)                                        # (B,T,N,d_v)
    V_dyn = jnp.concatenate([E_ed_dif[..., None], E_sd_dif[..., None]], axis=-1)

    graph_node = V_val * V_dispatch_mask[..., None]    # masked V_val (= b_V_val)

    # start-node embedding (decoder initial input)
    cur_nodes = V[bidx, start_idx, :]                  # (B,T,3)
    cur_dt = V_dt[bidx, start_idx][..., None]          # (B,T,1)
    start_fea = jnp.concatenate([cur_nodes, t_c[..., None], cur_dt], axis=-1)
    b_decoder_input = pallas_linear(start_fea.reshape(BT, -1),
                                    params["start_w"], params["start_b"])   # (BT,D)

    # masked distance matrices (computed to mirror reference; unused by the
    # simplified decoder — see TODO(synk) above)
    b_E_ed_t_masked = E_ed[:, None, :, :] * E_mask
    b_E_sd_t_masked = E_sd[:, None, :, :] * E_mask
    del b_E_ed_t_masked, b_E_sd_t_masked

    # courier embedding (unused by simplified decoder — see TODO(synk) above)
    cou_rep = jnp.repeat(cou[:, None, :], T, axis=1).reshape(BT, -1)
    wid = cou_rep[:, 0].astype(jnp.int32)
    embed_cou = jnp.concatenate([params["worker_emb"][wid], cou_rep[:, 1:4]], axis=1)
    del embed_cou

    # spatial encoder: node/edge embedding + all GCN layers in ONE Pallas kernel
    x_enc = pallas_gcn_stack(graph_node.reshape(BT, N, d_v),
                             E.reshape(BT, N, N, d_e), params)       # (BT,N,d_h)

    # temporal encoder: GRU over T (Pallas) + graph_linear
    gru_in = jnp.transpose(x_enc.reshape(B, T, N * d_h), (1, 0, 2))   # (T,B,N*H)
    h_seq = pallas_gru(gru_in, params["gru"]["w_ih"], params["gru"]["w_hh"],
                       params["gru"]["b_ih"], params["gru"]["b_hh"], d_h)
    h_seq = jnp.transpose(h_seq, (1, 0, 2)).reshape(BT, d_h)
    b_node_h_out = pallas_linear(h_seq, params["graph_linear_w"],
                                 params["graph_linear_b"]).reshape(BT, N, d_h)

    # pointer decoder (Pallas, single kernel invocation)
    enc = jnp.concatenate([
        b_node_h_out,
        graph_node.reshape(BT, N, d_v),
        V_dyn.reshape(BT, N, d_dyn),
    ], axis=-1)                                        # (BT, N, D)
    mask0 = jnp.asarray(V_reach_mask, jnp.float32).reshape(BT, N)
    logp, sel = pallas_decoder(enc, b_decoder_input, init_hx, init_cx, mask0,
                               params["decoder"])
    pointer_log_scores = jnp.transpose(logp, (1, 0, 2))      # (BT, N, N)
    pointer_argmax = jnp.transpose(sel[:, :, 0], (1, 0))     # (BT, N)
    return jnp.exp(pointer_log_scores), pointer_argmax, V_val


# ----------------------------------------------------------------------------
# Main
# ----------------------------------------------------------------------------
if __name__ == "__main__":
    cfg = dict(
        N=8,              # max_task_num + 2
        d_v=8, d_e=5, d_s=5, d_h=16, d_dyn=2, d_w=8,
        num_worker_pd=10, gcn_num_layers=2,
    )
    B, T, N = 2, 4, cfg["N"]
    D = cfg["d_h"] + cfg["d_v"] + cfg["d_dyn"]

    pkey = jax.random.PRNGKey(42)
    params = init_params(pkey, cfg)

    key = jax.random.PRNGKey(0)
    ks = jax.random.split(key, 16)
    V = jax.random.normal(ks[0], (B, N, 3), jnp.float32)
    V_reach_mask = jnp.zeros((B, T, N), dtype=bool)
    V_ft = jax.random.uniform(ks[1], (B, N), jnp.float32)
    V_pt = jax.random.uniform(ks[2], (B, N), jnp.float32)
    V_dt = jax.random.uniform(ks[3], (B, N), jnp.float32)
    V_num = jax.random.uniform(ks[4], (B, T, N), jnp.float32)
    V_dispatch_mask = (jax.random.uniform(ks[5], (B, T, N)) > 0.3).astype(jnp.float32)
    E = jax.random.normal(ks[6], (B, T, N, N, cfg["d_e"]), jnp.float32)
    E_ed = jax.random.uniform(ks[7], (B, N, N), jnp.float32)
    E_sd = jax.random.uniform(ks[8], (B, N, N), jnp.float32)
    E_mask = (jax.random.uniform(ks[9], (B, T, N, N)) > 0.3).astype(jnp.float32)
    start_idx = jax.random.randint(ks[10], (B, T), 0, N, jnp.int32)
    cou = jnp.concatenate([
        jax.random.randint(ks[11], (B, 1), 0, cfg["num_worker_pd"]).astype(jnp.float32),
        jax.random.uniform(ks[12], (B, 3), jnp.float32),
    ], axis=1)
    init_hx = jax.random.normal(ks[13], (B * T, D), jnp.float32)
    init_cx = jax.random.normal(ks[14], (B * T, D), jnp.float32)

    scores, argmax, b_V_val_unmasked = graph2route_forward(
        params, cfg, V, V_reach_mask, V_ft, V_pt, V_dt, V_num, V_dispatch_mask,
        E, E_ed, E_sd, E_mask, start_idx, cou, init_hx, init_cx)

    jax.block_until_ready((scores, argmax, b_V_val_unmasked))
    assert scores.shape == (B * T, N, N)
    assert argmax.shape == (B * T, N)
    assert b_V_val_unmasked.shape == (B, T, N, cfg["d_v"])
    print("KERNEL_OK")
</pallas_src>

<mosaic_0001>
module attributes {stable_mosaic.version = 11 : i64} {
  func.func @_linear_kernel(%arg0: i32, %arg1: memref<8x5xf32, #tpu.memory_space<vmem>>, %arg2: memref<5x26xf32, #tpu.memory_space<vmem>>, %arg3: memref<1x26xf32, #tpu.memory_space<vmem>>, %arg4: memref<8x26xf32, #tpu.memory_space<vmem>>) attributes {dimension_semantics = [#tpu.dimension_semantics<parallel>], iteration_bounds = array<i64: 1>, scalar_prefetch = 0 : i64, scratch_operands = 0 : i64, tpu.core_type = #tpu.core_type<tc>, window_params = [{transform_indices = @transform_0, window_bounds = array<i64: 8, 5>}, {pipeline_mode = #tpu.pipeline_mode<synchronous>, transform_indices = @transform_1, window_bounds = array<i64: 5, 26>}, {pipeline_mode = #tpu.pipeline_mode<synchronous>, transform_indices = @transform_2, window_bounds = array<i64: 1, 26>}, {transform_indices = @transform_3, window_bounds = array<i64: 8, 26>}]} {
    %c0 = arith.constant 0 : index
    %c0_0 = arith.constant 0 : index
    %0 = vector.load %arg1[%c0, %c0_0] : memref<8x5xf32, #tpu.memory_space<vmem>>, vector<8x5xf32>
    %c0_1 = arith.constant 0 : index
    %c0_2 = arith.constant 0 : index
    %1 = vector.load %arg2[%c0_1, %c0_2] : memref<5x26xf32, #tpu.memory_space<vmem>>, vector<5x26xf32>
    %cst = arith.constant dense<0.000000e+00> : vector<8x26xf32>
    %2 = tpu.matmul %0, %1, %cst {dimension_numbers = #tpu.dot_dimension_numbers<[1], [0], [0], [1], [0, 0, 1, 1], [], []>} : vector<8x5xf32>, vector<5x26xf32>, vector<8x26xf32> -> vector<8x26xf32>
    %c0_3 = arith.constant 0 : index
    %c0_4 = arith.constant 0 : index
    %3 = vector.load %arg3[%c0_3, %c0_4] : memref<1x26xf32, #tpu.memory_space<vmem>>, vector<1x26xf32>
    %4 = vector.broadcast %3 : vector<1x26xf32> to vector<8x26xf32>
    %5 = arith.addf %2, %4 : vector<8x26xf32>
    %c0_5 = arith.constant 0 : index
    %c0_6 = arith.constant 0 : index
    %6 = vector.load %arg4[%c0_5, %c0_6] : memref<8x26xf32, #tpu.memory_space<vmem>>, vector<8x26xf32>
    tpu.vector_store %arg4[%c0_5, %c0_6], %5 {strides = array<i32>} : memref<8x26xf32, #tpu.memory_space<vmem>>, vector<8x26xf32>,
    return
  }
  func.func @transform_0(%arg0: i32) -> (i32, i32) {
    %c0_i32 = arith.constant 0 : i32
    %c0_i32_0 = arith.constant 0 : i32
    return %arg0, %c0_i32 : i32, i32
  }
  func.func @transform_1(%arg0: i32) -> (i32, i32) {
    %c0_i32 = arith.constant 0 : i32
    %c0_i32_0 = arith.constant 0 : i32
    %c0_i32_1 = arith.constant 0 : i32
    return %c0_i32, %c0_i32_0 : i32, i32
  }
  func.func @transform_2(%arg0: i32) -> (i32, i32) {
    %c0_i32 = arith.constant 0 : i32
    %c0_i32_0 = arith.constant 0 : i32
    %c0_i32_1 = arith.constant 0 : i32
    return %c0_i32, %c0_i32_0 : i32, i32
  }
  func.func @transform_3(%arg0: i32) -> (i32, i32) {
    %c0_i32 = arith.constant 0 : i32
    %c0_i32_0 = arith.constant 0 : i32
    return %arg0, %c0_i32 : i32, i32
  }
}

</mosaic_0001>

<bundles_post_ra>
// kernel: tpu_custom_call.1
= control target key start
LH: loop header
LB: loop body
LE: loop exit
PB: predicated region body
PF: predicated region fallthrough
CT: control target
= control target key end

     0   :  { %8 = vsyncpa [#allocation3], 0  ;;  %s295_s0 = inlined_call_operand.hbm [shape: f32[8,5], index: 0, kind: input, shape index: {}]   ;;  %s296_s1 = inlined_call_operand.hbm [shape: f32[5,26], index: 1, kind: input, shape index: {}]   ;;  %s297_s2 = inlined_call_operand.vmem [shape: f32[1,26], index: 2, kind: input, shape index: {}]   ;;  %s298_s3 = inlined_call_operand.hbm [shape: f32[8,26], index: 3, kind: output, shape index: {}]  }
   0x1   :  { %9 = vsyncpa [#allocation6], 0 }
   0x2   :  { %10 = vsyncpa [#allocation4], 0  ;;  %s231_s12 = smov [#allocation2]   ;;  %s232_s14 = smov [#allocation5]  }
   0x3   :  { %s17_s13 = sshll.u32 %s231_s12, 4  ;;  %s27_s15 = sshll.u32 %s232_s14, 4  ;;  %s18_s13 = int_to_ptr.vmem [resolvable:$true] %s17_s13  ;;  %s28_s15 = int_to_ptr.vmem [resolvable:$true] %s27_s15 }
   0x4   :  { %s159_s18 = scalar_lea.hbm %s295_s0, 128 }
   0x5   :  { %p160_p0 = scmp.ne.s32.totalorder %s295_s0, %s159_s18  ;;  %p163_p1 = scmp.lt.u32.totalorder %s159_s18, %s295_s0 }
   0x7   :  { %p165_p2 = pnand %p163_p1, %p160_p0 }
   0x9   :  { %168 = shalt.err (!%p165_p2)
}
   0xa   :  { %s169_s23 = scalar_lea.vmem %s18_s13, 128  ;;  %p174_p4 = scmp.lt.s32.totalorder %s18_s13, %s18_s13 }
   0xb   :  { %p170_p3 = scmp.ne.s32.totalorder %s18_s13, %s169_s23  ;;  %p175_p5 = scmp.lt.s32.totalorder %s169_s23, %s169_s23 }
   0xd   :  { %p176_p6 = por %p175_p5, %p174_p4 }
   0xf   :  { %p177_p7 = pnand %p176_p6, %p170_p3 }
  0x11   :  { %180 = shalt.err (!%p177_p7)
}
  0x12   :  { %20 = dma.hbm_to_vmem [thread:$0]  %s295_s0, 128, %s18_s13, [#allocation3]  }
  0x13   :  { %s181_s28 = scalar_lea.hbm %s296_s1, 128 }
  0x14   :  { %p182_p8 = scmp.ne.s32.totalorder %s296_s1, %s181_s28  ;;  %p185_p9 = scmp.lt.u32.totalorder %s181_s28, %s296_s1 }
  0x16   :  { %p187_p10 = pnand %p185_p9, %p182_p8 }
  0x18   :  { %190 = shalt.err (!%p187_p10)
}
  0x19   :  { %s191_s6 = scalar_lea.vmem %s28_s15, 128  ;;  %p196_p12 = scmp.lt.s32.totalorder %s28_s15, %s28_s15 }
  0x1a   :  { %p192_p11 = scmp.ne.s32.totalorder %s28_s15, %s191_s6  ;;  %p197_p13 = scmp.lt.s32.totalorder %s191_s6, %s191_s6 }
  0x1c   :  { %p198_p0 = por %p197_p13, %p196_p12 }
  0x1e   :  { %p199_p1 = pnand %p198_p0, %p192_p11 }
  0x20   :  { %202 = shalt.err (!%p199_p1)
}
  0x21   :  { %30 = dma.hbm_to_vmem [thread:$0]  %s296_s1, 128, %s28_s15, [#allocation6]  }
  0x22   :  { %225 = dma.done.wait [#allocation3], 128  }
  0x23   :  { %226 = vsyncadd [#allocation3], 4294967168 }
  0x24   :  { %227 = dma.done.wait [#allocation6], 128  }
  0x25   :  { %228 = vsyncadd [#allocation6], 4294967168  ;;  %v233_v0 = vmov 0.0   ;;  %vm234_vm0 = vmmov 0   ;;  %vm52_vm1 = vcmask 1044480   ;;  %vm48_vm2 = vcmask 39936  }
  0x26   :  { %149 = vmatprep.subr.mxu0 %v233_v0  ;;  %151 = vmatprep.mubr.msk.f32.mxu0 %vm234_vm0, %v233_v0  ;;  %v40_v1 = vld [vmem:[#allocation5] sm:$0x1f]  ;;  %v39_v2 = vld [vmem:[#allocation2] sm:$0xff]  ;;  %s235_s10 = smov [#allocation7]   ;;  %vm126_vm3 = vcmask 211968  }
  0x27   :  { %150 = vmatpush3.msk.msra.mxu0 %vm52_vm1, %v40_v1  ;;  %v144_v3 = vld [vmem:[%s297_s2] ss:$0 sm:$0xff]  ;;  %s134_s1 = sshll.u32 %s235_s10, 4  ;;  %s135_s1 = int_to_ptr.vmem [resolvable:$true] %s134_s1 }
  0x28   :  { %152 = vmatmul.mubr.msk.f32.vlgmr.msra.gmra.mrb[0].mxu0 %vm48_vm2, %v39_v2  ;;  %s203_s11 = scalar_lea.vmem %s135_s1, 128  ;;  %p208_p3 = scmp.lt.s32.totalorder %s135_s1, %s135_s1 }
  0x29   :  { %p204_p2 = scmp.ne.s32.totalorder %s135_s1, %s203_s11  ;;  %p209_p4 = scmp.lt.s32.totalorder %s203_s11, %s203_s11 }
  0x2b   :  { %p210_p5 = por %p209_p4, %p208_p3 }
  0x2d   :  { %p211_p6 = pnand %p210_p5, %p204_p2 }
  0xfb   :  { %v122_v4 = vpop.f32.mrb[0].mxu0 }
  0xfc   :  { %v123_v5 = vadd.f32 %v144_v3, %v122_v4  ;;  %v153_v6 = vpop.f32.mrb[1].mxu0 }
  0xfe   :  { %127 = vst.msk [vmem:[#allocation7] sm:$0xff] %vm126_vm3, %v123_v5 }
  0xff   :  { %214 = shalt.err (!%p211_p6)
}
 0x100   :  { %s215_s14 = scalar_lea.hbm %s298_s3, 128 }
 0x101   :  { %p216_p7 = scmp.ne.s32.totalorder %s298_s3, %s215_s14  ;;  %p219_p8 = scmp.lt.u32.totalorder %s215_s14, %s298_s3 }
 0x103   :  { %p221_p9 = pnand %p219_p8, %p216_p7 }
 0x105   :  { %224 = shalt.err (!%p221_p9)
}
 0x106   :  { %137 = dma.vmem_to_hbm [thread:$0]  %s135_s1, 128, %s298_s3, [#allocation4]  }
 0x107   :  { %229 = dma.done.wait [#allocation4], 128  }
 0x108   :  { %230 = vsyncadd [#allocation4], 4294967168 }
 0x109   :  { %141 = vsyncpa [#allocation3], 1 }
 0x10a   :  { %142 = vsyncpa [#allocation6], 1 }
 0x10b   :  { %143 = vsyncpa [#allocation4], 1 }

</bundles_post_ra>
